<compile_context>
chip_gen: v6e
topology: v6e:2x2x1
jax: 0.10.0
libtpu: 0.0.40
codegen_flags: <defaults>
</compile_context>

<pallas_src>
from functools import partial
from math import sqrt

import jax
import jax.numpy as jnp
from jax.experimental import pallas as pl
from jax.experimental.pallas import tpu as pltpu


def scalar_mlp_kernel(x_ref, w0_ref, w1_ref, o_ref):
    """Fused 2-layer scalar MLP on lane-packed rows: (x @ W0p) -> silu -> (@ W1p).

    Weights arrive pre-scaled (alphas folded in) and pre-packed block-diagonally,
    so the body is exactly: 2 MXU passes + SiLU (VPU/EUP) + one dense store.
    Casting to the weight dtype is a no-op on the f32 path and a cheap VPU cast
    on the bf16 path; accumulation is always f32.
    """
    x = x_ref[...].astype(w0_ref.dtype)
    h = jnp.dot(x, w0_ref[...], preferred_element_type=jnp.float32)
    h = h * jax.nn.sigmoid(h)  # SiLU in f32 (VPU + EUP)
    out = jnp.dot(h.astype(w1_ref.dtype), w1_ref[...],
                  preferred_element_type=jnp.float32)
    o_ref[...] = out.astype(o_ref.dtype)


def pack_scalar_mlp_weights(w0, w1, alpha0, alpha1, *, pack=4,
                            compute_dtype=jnp.float32):
    """Fold alphas into the weights and build 128-lane block-diagonal copies.

    Scale + kron are done in f32 regardless of compute_dtype; cast last.
    Call ONCE per weight update (hoisted out of the forward path).
    """
    eye = jnp.eye(pack, dtype=jnp.float32)
    w0p = jnp.kron(eye, w0.astype(jnp.float32) * alpha0)  # [pack*D_in, pack*H]
    w1p = jnp.kron(eye, w1.astype(jnp.float32) * alpha1)  # [pack*H, pack*D_out]
    return w0p.astype(compute_dtype), w1p.astype(compute_dtype)


@partial(jax.jit, static_argnames=("pack", "max_block_rows"))
def scalar_mlp_forward(x, w0p, w1p, *, pack=4, max_block_rows=4096):
    """x: [N, D_in], packed weights from pack_scalar_mlp_weights -> [N, D_out].

    pack=4 packs 4 nodes per 128-lane row; block-diagonal weights keep each
    node's features confined to its own weight copy.
    """
    n, d_in = x.shape
    in_lanes, hid_lanes = w0p.shape
    out_lanes = w1p.shape[1]
    assert in_lanes == pack * d_in, "packed weights do not match x / pack"
    d_out = out_lanes // pack
    out_dtype = x.dtype

    # --- Pad only to a multiple of pack (<= pack-1 rows; skipped when divisible).
    n_packed = pl.cdiv(n, pack)
    pad = n_packed * pack - n
    if pad:
        x = jnp.pad(x, ((0, pad), (0, 0)))  # silu(0)=0, rows dropped at the end
    xp = x.reshape(n_packed, in_lanes)      # free reshape: lane-dense 128-wide rows

    # --- Block sizing: multiple of the sublane tile, capped at max_block_rows,
    #     and capped at ~half the rows so grid >= 2 (both v7x TensorCores busy).
    sublane = 8 if jnp.dtype(x.dtype).itemsize >= 4 else 16
    half = sublane * pl.cdiv(pl.cdiv(n_packed, 2), sublane)
    block_rows = max(sublane, min(max_block_rows, half))
    grid = pl.cdiv(n_packed, block_rows)    # last block may be partial (OOB-safe)

    # NOTE: flops count the padded 128x128 block-diagonal MXU work (4x the
    # model's useful FLOPs) on purpose — that is what the hardware executes.
    cost = pl.CostEstimate(
        flops=2 * n_packed * in_lanes * hid_lanes
        + 2 * n_packed * hid_lanes * out_lanes,
        transcendentals=n_packed * hid_lanes,
        bytes_accessed=xp.size * xp.dtype.itemsize
        + w0p.size * w0p.dtype.itemsize
        + w1p.size * w1p.dtype.itemsize
        + n_packed * out_lanes * jnp.dtype(out_dtype).itemsize,
    )

    out_packed = pl.pallas_call(
        scalar_mlp_kernel,
        out_shape=jax.ShapeDtypeStruct((n_packed, out_lanes), out_dtype),
        grid_spec=pltpu.PrefetchScalarGridSpec(
            num_scalar_prefetch=0,
            grid=(grid,),
            in_specs=[
                # x tile: streams through, double-buffered by BlockSpec pipelining.
                pl.BlockSpec((block_rows, in_lanes), lambda i: (i, 0)),
                # Weights: constant index_map -> resident; single buffer is enough.
                pl.BlockSpec((in_lanes, hid_lanes), lambda i: (0, 0),
                             pipeline_mode=pl.Buffered(1)),
                pl.BlockSpec((hid_lanes, out_lanes), lambda i: (0, 0),
                             pipeline_mode=pl.Buffered(1)),
            ],
            out_specs=pl.BlockSpec((block_rows, out_lanes), lambda i: (i, 0)),
        ),
        compiler_params=pltpu.CompilerParams(
            dimension_semantics=("parallel",),   # megacore-shardable row axis
            vmem_limit_bytes=32 * 1024 * 1024,   # non-constraining for <=4096-row blocks
        ),
        cost_estimate=cost,
    )(xp, w0p, w1p)

    # Un-pack: [n_packed, pack*D_out] -> [n_packed*pack, D_out] (free reshape);
    # drop the <= pack-1 pad rows only if they were added.
    out = out_packed.reshape(n_packed * pack, d_out)
    if pad:
        out = out[:n]
    return out


def reference_forward(x, w0, w1, alpha0, alpha1):
    h = x @ (w0 * alpha0)
    h = h * jax.nn.sigmoid(h)
    return h @ (w1 * alpha1)


if __name__ == "__main__":
    # ScalarMLP hyperparameters (small, consistent with the module)
    input_dim = 32
    hidden_width = 32
    output_dim = 32
    num_nodes = 203  # NOT a multiple of 4/8: exercises pack pad + partial tail block + grid=2

    # alphas from ScalarMLPFunction (forward_weight_init=True, nonlinearity='silu'):
    #   layer 0: gain=1.0,     norm_dim=input_dim    -> alpha0 = 1 / sqrt(input_dim)
    #   layer 1: gain=sqrt(2), norm_dim=hidden_width -> alpha1 = sqrt(2) / sqrt(hidden_width)
    alpha0 = 1.0 / sqrt(input_dim)
    alpha1 = sqrt(2.0) / sqrt(hidden_width)

    key = jax.random.PRNGKey(0)
    kx, k0, k1 = jax.random.split(key, 3)

    # node features field: [num_nodes, input_dim]
    x = jax.random.normal(kx, (num_nodes, input_dim), dtype=jnp.float32)

    # ScalarLinearLayer init_mode='uniform': U(-sqrt(3), sqrt(3)), shape (in, out)
    w0 = jax.random.uniform(
        k0, (input_dim, hidden_width), minval=-sqrt(3.0), maxval=sqrt(3.0),
        dtype=jnp.float32)
    w1 = jax.random.uniform(
        k1, (hidden_width, output_dim), minval=-sqrt(3.0), maxval=sqrt(3.0),
        dtype=jnp.float32)

    ref = reference_forward(x, w0, w1, alpha0, alpha1)

    # --- f32 path: exact module semantics (default). Weights packed once, reused.
    w0p, w1p = pack_scalar_mlp_weights(w0, w1, alpha0, alpha1)
    out = jax.block_until_ready(scalar_mlp_forward(x, w0p, w1p))
    assert out.shape == (num_nodes, output_dim)
    assert jnp.allclose(out, ref, atol=1e-4, rtol=1e-4), "f32 mismatch vs reference"

    # --- bf16-operand path (v5e MXU-rate option; f32 accumulation). Loose tolerance
    #     only because bf16 operands intentionally round inputs/weights.
    w0p_bf, w1p_bf = pack_scalar_mlp_weights(
        w0, w1, alpha0, alpha1, compute_dtype=jnp.bfloat16)
    out_bf = jax.block_until_ready(scalar_mlp_forward(x, w0p_bf, w1p_bf))
    assert out_bf.shape == (num_nodes, output_dim)
    assert float(jnp.max(jnp.abs(out_bf - ref))) < 0.25, "bf16 path diverged"

    print("KERNEL_OK")
</pallas_src>

<mosaic_0001>
module attributes {stable_mosaic.version = 11 : i64} {
  func.func @scalar_mlp_kernel(%arg0: i32, %arg1: memref<32x128xf32, #tpu.memory_space<vmem>>, %arg2: memref<128x128xf32, #tpu.memory_space<vmem>>, %arg3: memref<128x128xf32, #tpu.memory_space<vmem>>, %arg4: memref<32x128xf32, #tpu.memory_space<vmem>>) attributes {dimension_semantics = [#tpu.dimension_semantics<parallel>], iteration_bounds = array<i64: 2>, scalar_prefetch = 0 : i64, scratch_operands = 0 : i64, tpu.core_type = #tpu.core_type<tc>, window_params = [{transform_indices = @transform_0, window_bounds = array<i64: 32, 128>}, {pipeline_mode = #tpu.pipeline_mode<synchronous>, transform_indices = @transform_1, window_bounds = array<i64: 128, 128>}, {pipeline_mode = #tpu.pipeline_mode<synchronous>, transform_indices = @transform_2, window_bounds = array<i64: 128, 128>}, {transform_indices = @transform_3, window_bounds = array<i64: 32, 128>}]} {
    %c0 = arith.constant 0 : index
    %c0_0 = arith.constant 0 : index
    %0 = vector.load %arg1[%c0, %c0_0] : memref<32x128xf32, #tpu.memory_space<vmem>>, vector<32x128xf32>
    %c0_1 = arith.constant 0 : index
    %c0_2 = arith.constant 0 : index
    %1 = vector.load %arg2[%c0_1, %c0_2] : memref<128x128xf32, #tpu.memory_space<vmem>>, vector<128x128xf32>
    %cst = arith.constant dense<0.000000e+00> : vector<32x128xf32>
    %2 = tpu.matmul %0, %1, %cst {dimension_numbers = #tpu.dot_dimension_numbers<[1], [0], [0], [1], [0, 0, 1, 1], [], []>} : vector<32x128xf32>, vector<128x128xf32>, vector<32x128xf32> -> vector<32x128xf32>
    %3 = arith.negf %2 : vector<32x128xf32>
    %4 = math.exp %3 : vector<32x128xf32>
    %cst_3 = arith.constant 1.000000e+00 : f32
    %5 = vector.broadcast %cst_3 : f32 to vector<32x128xf32>
    %6 = arith.addf %5, %4 : vector<32x128xf32>
    %7 = arith.divf %5, %6 : vector<32x128xf32>
    %8 = arith.mulf %2, %7 : vector<32x128xf32>
    %c0_4 = arith.constant 0 : index
    %c0_5 = arith.constant 0 : index
    %9 = vector.load %arg3[%c0_4, %c0_5] : memref<128x128xf32, #tpu.memory_space<vmem>>, vector<128x128xf32>
    %cst_6 = arith.constant dense<0.000000e+00> : vector<32x128xf32>
    %10 = tpu.matmul %8, %9, %cst_6 {dimension_numbers = #tpu.dot_dimension_numbers<[1], [0], [0], [1], [0, 0, 1, 1], [], []>} : vector<32x128xf32>, vector<128x128xf32>, vector<32x128xf32> -> vector<32x128xf32>
    %c0_7 = arith.constant 0 : index
    %c0_8 = arith.constant 0 : index
    %11 = vector.load %arg4[%c0_7, %c0_8] : memref<32x128xf32, #tpu.memory_space<vmem>>, vector<32x128xf32>
    tpu.vector_store %arg4[%c0_7, %c0_8], %10 {strides = array<i32>} : memref<32x128xf32, #tpu.memory_space<vmem>>, vector<32x128xf32>,
    return
  }
  func.func @transform_0(%arg0: i32) -> (i32, i32) {
    %c0_i32 = arith.constant 0 : i32
    %c0_i32_0 = arith.constant 0 : i32
    return %arg0, %c0_i32 : i32, i32
  }
  func.func @transform_1(%arg0: i32) -> (i32, i32) {
    %c0_i32 = arith.constant 0 : i32
    %c0_i32_0 = arith.constant 0 : i32
    %c0_i32_1 = arith.constant 0 : i32
    return %c0_i32, %c0_i32_0 : i32, i32
  }
  func.func @transform_2(%arg0: i32) -> (i32, i32) {
    %c0_i32 = arith.constant 0 : i32
    %c0_i32_0 = arith.constant 0 : i32
    %c0_i32_1 = arith.constant 0 : i32
    return %c0_i32, %c0_i32_0 : i32, i32
  }
  func.func @transform_3(%arg0: i32) -> (i32, i32) {
    %c0_i32 = arith.constant 0 : i32
    %c0_i32_0 = arith.constant 0 : i32
    return %arg0, %c0_i32 : i32, i32
  }
}

</mosaic_0001>

<bundles_post_ra>
// kernel: scalar_mlp_forward.1
= control target key start
LH: loop header
LB: loop body
LE: loop exit
PB: predicated region body
PF: predicated region fallthrough
CT: control target
= control target key end

     0   :  { %s1017_s12 = smov 0   ;;  %s1019_s13 = smov 0   ;;  %s1219_s0 = inlined_call_operand.vmem [shape: f32[51,128], index: 0, kind: input, shape index: {}]   ;;  %s1220_s1 = inlined_call_operand.vmem [shape: f32[128,128], index: 1, kind: input, shape index: {}]   ;;  %s1221_s2 = inlined_call_operand.vmem [shape: f32[128,128], index: 2, kind: input, shape index: {}]   ;;  %s1222_s3 = inlined_call_operand.vmem [shape: f32[51,128], index: 3, kind: output, shape index: {}]  }
   0x1   :  { %s1021_s14 = smov 0  }
   0x2 LB: > { %s1030_s15 = sadd.s32 4294967295, %s963_s14   ;;  %s1032_s16 = sadd.s32 1, %s963_s14   ;;  %s963_s14 = sphi %s1021_s14, %s1229_s14   ;;  %s959_s13 = sphi %s1019_s13, %s1228_s13   ;;  %s955_s12 = sphi %s1017_s12, %s1227_s12  }
   0x3   : > { %s85_s17 = ssub.s32 %s963_s14, %s1032_s16  ;;  %s88_s18 = sadd.s32 1, %s959_s13 }
   0x4   : > { %p86_p0 = scmp.eq.s32.totalorder %s85_s17, 0  ;;  %p98_p1 = scmp.ne.s32.totalorder %s959_s13, %s955_s12 }
   0x5   : > { %p99_p2 = scmp.eq.s32.totalorder %s1030_s15, 1  ;;  %p661_p3 = scmp.ge.s32.totalorder %s963_s14, 1 }
   0x6   : > { %s1040_s19 = scalar_select %p86_p0, %s959_s13, %s88_s18  }
   0x7   : > { %p1042_p4 = por %p99_p2, %p98_p1  ;;  %p146_p5 = scmp.lt.s32.totalorder %s963_s14, 3 }
   0x9   : > { %p147_p6 = pnand %p661_p3, %p146_p5 }
   0xa   : > { %s1053_s25 = sshll.u32 (!%p147_p6), %s1030_s15, 2 }
   0xb   : > { %150 = sbr.rel (%p147_p6) target bundleno = 518 (0x206), region = 32  ;;  %p178_p7 = scmp.lt.s32.totalorder (!%p147_p6), %s1053_s25, 6 }
  0x10   : > { %v211_v0 = vld [vmem:[%s1220_s1 + $0x78] sm:$0xff]  ;;  %v210_v1 = vld [vmem:[%s1220_s1 + $0x70] sm:$0xff]  ;;  %v209_v2 = vld [vmem:[%s1220_s1 + $0x68] sm:$0xff]  ;;  %s179_s28 = scalar_select %p178_p7, %s1053_s25, 6 }
  0x11   : > { %729 = vmatprep.subr.mxu0 %v211_v0  ;;  %v208_v3 = vld [vmem:[%s1220_s1 + $0x60] sm:$0xff]  ;;  %v207_v4 = vld [vmem:[%s1220_s1 + $0x58] sm:$0xff]  ;;  %v206_v6 = vld [vmem:[%s1220_s1 + $0x50] sm:$0xff]  ;;  %s686_s7 = sshll.u32 (%p1042_p4), %s1030_s15, 5 }
  0x12   : > { %730 = vmatpush3.msra.mxu0 %v211_v0  ;;  %s664_s4 = sshll.u32 %s179_s28, 3  ;;  %v205_v7 = vld [vmem:[%s1220_s1 + $0x48] sm:$0xff]  ;;  %v204_v8 = vld [vmem:[%s1220_s1 + $0x40] sm:$0xff]  ;;  %v203_v9 = vld [vmem:[%s1220_s1 + $0x38] sm:$0xff]  ;;  %s1170_s11 = scalar_lea.vmem (%p1042_p4), %s1222_s3, %s686_s7  }
  0x13   : > { %731 = vmatprep.subr.mxu0 %v210_v1  ;;  %s1069_s9 = scalar_lea.vmem %s1219_s0, %s664_s4  ;;  %v202_v10 = vld [vmem:[%s1220_s1 + $0x30] sm:$0xff]  ;;  %v201_v11 = vld [vmem:[%s1220_s1 + $0x28] sm:$0xff]  ;;  %v200_v12 = vld [vmem:[%s1220_s1 + $0x20] sm:$0xff]  ;;  %s170_s4 = sand.u32 1, %s955_s12  }
  0x14   : > { %732 = vmatpush3.msra.mxu0 %v210_v1  ;;  %v192_v5 = vld [vmem:[%s1069_s9] sm:$0xff]  ;;  %v199_v13 = vld [vmem:[%s1220_s1 + $0x18] sm:$0xff]  ;;  %v198_v14 = vld [vmem:[%s1220_s1 + $0x10] sm:$0xff]  ;;  %s662_s5 = sshll.u32 %s170_s4, 5  ;;  %s438_s12 = ssub.s32 (%p1042_p4), 7, %s1053_s25 }
  0x15   : > { %733 = vmatprep.subr.mxu0 %v209_v2  ;;  %761 = vmatprep.mubr.f32.mxu0 %v192_v5  ;;  %v197_v15 = vld [vmem:[%s1220_s1 + $0x8] sm:$0xff]  ;;  %v196_v16 = vld [vmem:[%s1220_s1] sm:$0xff]  ;;  %v194_v18 = vld [vmem:[%s1069_s9 + $0x10] sm:$0xff]  ;;  %s1157_s6 = scalar_lea.vmem [#allocation2], %s662_s5   ;;  %p439_p8 = scmp.lt.s32.totalorder (%p1042_p4), %s438_s12, 4 }
  0x16   : > { %734 = vmatpush3.msra.mxu0 %v209_v2  ;;  %v193_v17 = vld [vmem:[%s1069_s9 + $0x8] sm:$0xff]  ;;  %v195_v19 = vld [vmem:[%s1069_s9 + $0x18] sm:$0xff]  ;;  %v339_v21 = vld [vmem:[%s1221_s2 + $0x70] sm:$0xff] }
  0x17   : > { %735 = vmatprep.subr.mxu0 %v208_v3  ;;  %v340_v20 = vld [vmem:[%s1221_s2 + $0x78] sm:$0xff]  ;;  %v338_v22 = vld [vmem:[%s1221_s2 + $0x68] sm:$0xff]  ;;  %v337_v23 = vld [vmem:[%s1221_s2 + $0x60] sm:$0xff] }
  0x18   : > { %736 = vmatpush3.msra.mxu0 %v208_v3  ;;  %767 = vmatprep.subr.mxu1 %v340_v20  ;;  %v336_v24 = vld [vmem:[%s1221_s2 + $0x58] sm:$0xff]  ;;  %v335_v25 = vld [vmem:[%s1221_s2 + $0x50] sm:$0xff]  ;;  %v334_v26 = vld [vmem:[%s1221_s2 + $0x48] sm:$0xff] }
  0x19   : > { %737 = vmatprep.subr.mxu0 %v207_v4  ;;  %768 = vmatpush3.msra.mxu1 %v340_v20  ;;  %v333_v27 = vld [vmem:[%s1221_s2 + $0x40] sm:$0xff]  ;;  %v332_v28 = vld [vmem:[%s1221_s2 + $0x38] sm:$0xff]  ;;  %v331_v29 = vld [vmem:[%s1221_s2 + $0x30] sm:$0xff] }
  0x1a   : > { %738 = vmatpush3.msra.mxu0 %v207_v4  ;;  %769 = vmatprep.subr.mxu1 %v339_v21  ;;  %v330_v30 = vld [vmem:[%s1221_s2 + $0x28] sm:$0xff]  ;;  %v329_v31 = vld [vmem:[%s1221_s2 + $0x20] sm:$0xff]  ;;  %v328_v32 = vld [vmem:[%s1221_s2 + $0x18] sm:$0xff] }
  0x1b   : > { %739 = vmatprep.subr.mxu0 %v206_v6  ;;  %770 = vmatpush3.msra.mxu1 %v339_v21  ;;  %v327_v33 = vld [vmem:[%s1221_s2 + $0x10] sm:$0xff]  ;;  %v326_v34 = vld [vmem:[%s1221_s2 + $0x8] sm:$0xff]  ;;  %v325_v35 = vld [vmem:[%s1221_s2] sm:$0xff] }
  0x1c   : > { %740 = vmatpush3.msra.mxu0 %v206_v6  ;;  %771 = vmatprep.subr.mxu1 %v338_v22 }
  0x1d   : > { %741 = vmatprep.subr.mxu0 %v205_v7  ;;  %772 = vmatpush3.msra.mxu1 %v338_v22 }
  0x1e   : > { %742 = vmatpush3.msra.mxu0 %v205_v7  ;;  %773 = vmatprep.subr.mxu1 %v337_v23 }
  0x1f   : > { %743 = vmatprep.subr.mxu0 %v204_v8  ;;  %774 = vmatpush3.msra.mxu1 %v337_v23 }
  0x20   : > { %744 = vmatpush3.msra.mxu0 %v204_v8  ;;  %775 = vmatprep.subr.mxu1 %v336_v24 }
  0x21   : > { %745 = vmatprep.subr.mxu0 %v203_v9  ;;  %776 = vmatpush3.msra.mxu1 %v336_v24 }
  0x22   : > { %746 = vmatpush3.msra.mxu0 %v203_v9  ;;  %777 = vmatprep.subr.mxu1 %v335_v25 }
  0x23   : > { %747 = vmatprep.subr.mxu0 %v202_v10  ;;  %778 = vmatpush3.msra.mxu1 %v335_v25 }
  0x24   : > { %748 = vmatpush3.msra.mxu0 %v202_v10  ;;  %779 = vmatprep.subr.mxu1 %v334_v26 }
  0x25   : > { %749 = vmatprep.subr.mxu0 %v201_v11  ;;  %780 = vmatpush3.msra.mxu1 %v334_v26 }
  0x26   : > { %750 = vmatpush3.msra.mxu0 %v201_v11  ;;  %781 = vmatprep.subr.mxu1 %v333_v27 }
  0x27   : > { %751 = vmatprep.subr.mxu0 %v200_v12  ;;  %782 = vmatpush3.msra.mxu1 %v333_v27 }
  0x28   : > { %752 = vmatpush3.msra.mxu0 %v200_v12  ;;  %783 = vmatprep.subr.mxu1 %v332_v28 }
  0x29   : > { %753 = vmatprep.subr.mxu0 %v199_v13  ;;  %784 = vmatpush3.msra.mxu1 %v332_v28 }
  0x2a   : > { %754 = vmatpush3.msra.mxu0 %v199_v13  ;;  %785 = vmatprep.subr.mxu1 %v331_v29 }
  0x2b   : > { %755 = vmatprep.subr.mxu0 %v198_v14  ;;  %786 = vmatpush3.msra.mxu1 %v331_v29 }
  0x2c   : > { %756 = vmatpush3.msra.mxu0 %v198_v14  ;;  %787 = vmatprep.subr.mxu1 %v330_v30 }
  0x2d   : > { %757 = vmatprep.subr.mxu0 %v197_v15  ;;  %788 = vmatpush3.msra.mxu1 %v330_v30 }
  0x2e   : > { %758 = vmatpush3.msra.mxu0 %v197_v15  ;;  %789 = vmatprep.subr.mxu1 %v329_v31 }
  0x2f   : > { %759 = vmatprep.subr.mxu0 %v196_v16  ;;  %790 = vmatpush3.msra.mxu1 %v329_v31 }
  0x30   : > { %760 = vmatpush3.msra.mxu0 %v196_v16  ;;  %791 = vmatprep.subr.mxu1 %v328_v32 }
  0x31   : > { %762 = vmatmul.mubr.f32.vlgmr.msra.gmra.mxu0 %v193_v17  ;;  %792 = vmatpush3.msra.mxu1 %v328_v32 }
  0x32   : > { %764 = vmatprep.mubr.f32.mxu0 %v194_v18  ;;  %793 = vmatprep.subr.mxu1 %v327_v33 }
  0x33   : > { %794 = vmatpush3.msra.mxu1 %v327_v33 }
  0x34   : > { %795 = vmatprep.subr.mxu1 %v326_v34 }
  0x35   : > { %765 = vmatmul.mubr.f32.gmra.mxu0 %v195_v19  ;;  %796 = vmatpush3.msra.mxu1 %v326_v34 }
  0x36   : > { %797 = vmatprep.subr.mxu1 %v325_v35 }
  0x37   : > { %798 = vmatpush3.msra.mxu1 %v325_v35 }
  0xf1   : > { %v763_v36 = vpop.f32.mrf.mxu0 }
  0xf2   : > { %v666_v37 = vmul.f32 -1.442695, %v763_v36 }
  0xf3   : > { %v278_v38 = vpop.f32.mrf.mxu0 }
  0xf4   : > { %893 = vpow2.f32 %v666_v37  ;;  %v665_v39 = vmul.f32 -1.442695, %v278_v38 }
  0xf5   : > { %v766_v40 = vpop.f32.mrf.mxu0 }
  0xf6   : > { %895 = vpow2.f32 %v665_v39  ;;  %v668_v41 = vmul.f32 -1.442695, %v766_v40 }
  0xf7   : > { %v288_v42 = vpop.f32.mrf.mxu0 }
  0xf8   : > { %897 = vpow2.f32 %v668_v41  ;;  %v667_v43 = vmul.f32 -1.442695, %v288_v42 }
  0xfa   : > { %899 = vpow2.f32 %v667_v43 }
 0x101   : > { %v894_v44 = vpop.eup %893 }
 0x102   : > { %v310_v45 = vadd.f32 1.0, %v894_v44 }
 0x103   : > { %v896_v46 = vpop.eup %895 }
 0x104   : > { %v309_v47 = vadd.f32 1.0, %v896_v46  ;;  %901 = vrcp.f32 %v310_v45 }
 0x105   : > { %v898_v48 = vpop.eup %897 }
 0x106   : > { %903 = vrcp.f32 %v309_v47  ;;  %v312_v49 = vadd.f32 1.0, %v898_v48 }
 0x107   : > { %v900_v50 = vpop.eup %899 }
 0x108   : > { %v311_v51 = vadd.f32 1.0, %v900_v50  ;;  %905 = vrcp.f32 %v312_v49 }
 0x10a   : > { %907 = vrcp.f32 %v311_v51 }
 0x111   : > { %v902_v52 = vpop.eup %901 }
 0x112   : > { %v322_v55 = vmul.f32 %v902_v52, %v763_v36 }
 0x113   : > { %v904_v53 = vpop.eup %903 }
 0x114   : > { %v321_v54 = vmul.f32 %v904_v53, %v278_v38 }
 0x115   : > { %v906_v56 = vpop.eup %905 }
 0x116   : > { %799 = vmatprep.mubr.f32.mxu1 %v321_v54  ;;  %v324_v59 = vmul.f32 %v906_v56, %v766_v40 }
 0x117   : > { %v908_v57 = vpop.eup %907  ;;  %800 = vmatmul.mubr.f32.vlgmr.msra.gmra.mxu1 %v322_v55 }
 0x118   : > { %v323_v58 = vmul.f32 %v908_v57, %v288_v42 }
 0x11a   : > { %802 = vmatprep.mubr.f32.mxu1 %v323_v58 }
 0x11b   : > { %803 = vmatmul.mubr.f32.gmra.mxu1 %v324_v59 }
 0x1d7   : > { %v801_v60 = vpop.f32.mrf.mxu1 }
 0x1d8   : > { %427 = vst [vmem:[%s1157_s6 + $0x8] sm:$0xff] %v801_v60 }
 0x1d9   : > { %v407_v61 = vpop.f32.mrf.mxu1 }
 0x1da   : > { %426 = vst [vmem:[%s1157_s6] sm:$0xff] %v407_v61  ;;  %436 = sbr.rel (!%p1042_p4) target bundleno = 518 (0x206), region = 36 }
 0x1db   : > { %v804_v62 = vpop.f32.mrf.mxu1 }
 0x1dc   : > { %429 = vst [vmem:[%s1157_s6 + $0x18] sm:$0xff] %v804_v62 }
 0x1dd   : > { %v417_v63 = vpop.f32.mrf.mxu1 }
 0x1de   : > { %428 = vst [vmem:[%s1157_s6 + $0x10] sm:$0xff] %v417_v63 }
 0x1df   : > { %s1231_s12 = smov (!%p439_p8, %s438_s12), 4 }
 0x1e0   : > { %s671_s14 = sshll.u32 %s1231_s12, 7 }
 0x1e1   : > { %p674_p9 = scmp.eq.s32.totalorder %s671_s14, 0 }
 0x1e2   : > { %s1176_s17 = sshrl.u32 (!%p674_p9), %s1231_s12, 2 }
 0x1e3   : > { %447 = sbr.rel (%p674_p9) target bundleno = 518 (0x206), region = 40  ;;  %p675_p10 = scmp.le.s32.totalorder (!%p674_p9), %s1176_s17, 0 }
 0x1e8   : > { %614 = sbr.rel (%p675_p10) target bundleno = 501 (0x1f5), region = 116  ;;  %s1224_s15 = smov (!%p675_p10), %s1170_s11 }
 0x1e9   : > { %s1225_s20 = smov (!%p675_p10), %s1157_s6  ;;  %s1185_s25 = smov (!%p675_p10), 0  }
 0x1ea   : > { %s977_s18 = smov (!%p675_p10), 0  }
 0x1ed LB: >> { %v516_v0 = vld [vmem:[%s971_s20] sm:$0xff]  ;;  %v518_v1 = vld [vmem:[%s971_s20 + $0x8] sm:$0xff]  ;;  %v520_v2 = vld [vmem:[%s971_s20 + $0x10] sm:$0xff]  ;;  %s524_s21 = sadd.s32 1, %s975_s25  ;;  %s510_s18 = sadd.s32 1, %s979_s18   ;;  %s979_s18 = sphi %s977_s18, %s510_s18   ;;  %s975_s25 = sphi %s1185_s25, %s1226_s25   ;;  %s971_s20 = sphi %s1225_s20, %s529_s20   ;;  %s967_s15 = sphi %s1224_s15, %s530_s15  }
 0x1ee   : >> { %517 = vst [vmem:[%s967_s15] sm:$0xff] %v516_v0  ;;  %519 = vst [vmem:[%s967_s15 + $0x8] sm:$0xff] %v518_v1  ;;  %v522_v3 = vld [vmem:[%s971_s20 + $0x18] sm:$0xff]  ;;  %p525_p11 = scmp.ge.s32.totalorder %s524_s21, %s1176_s17  ;;  %p509_p12 = scmp.ge.s32.totalorder %s510_s18, %s1176_s17 }
 0x1ef   : >> { %521 = vst [vmem:[%s967_s15 + $0x10] sm:$0xff] %v520_v2  ;;  %523 = vst [vmem:[%s967_s15 + $0x18] sm:$0xff] %v522_v3 }
 0x1f0   : >> { %s1233_s21 = smov (%p525_p11, %s524_s21), 0  ;;  %512 = sbr.rel (!%p509_p12) target bundleno = 493 (0x1ed), region = 122 }
 0x1f1   : >> { %s676_s22 = sshll.u32 %s1233_s21, 5  ;;  %s1226_s25 = smov %s1233_s21 }
 0x1f2   : >> { %s529_s20 = scalar_lea.vmem %s1157_s6, %s676_s22 [#allocation2]   ;;  %s530_s15 = scalar_lea.vmem %s1170_s11, %s676_s22  }
 0x1f5 PF: > { %s1201_s23 = sand.u32 3, %s1231_s12   ;;  %s687_s24 = sshll.u32 %s1176_s17, 5 }
 0x1f6   : > { %s535_s9 = scalar_lea.vmem %s1157_s6, %s687_s24 [#allocation2]   ;;  %s537_s26 = scalar_lea.vmem %s1170_s11, %s687_s24  }
 0x1f7   : > { %p681_p13 = scmp.le.s32.totalorder %s1201_s23, 0 }
 0x1f8   : > { %s981_s27 = smov (!%p681_p13), %s537_s26   ;;  %s985_s28 = smov (!%p681_p13), %s535_s9  }
 0x1f9   : > { %628 = sbr.rel (%p681_p13) target bundleno = 518 (0x206), region = 127  ;;  %s989_s29 = smov (!%p681_p13), 0  }
 0x1fa   : > { %s993_s30 = smov (!%p681_p13), 0  }
 0x1fe LB: >> { %v547_v4 = vld [vmem:[%s987_s28] sm:$0xff]  ;;  %s549_s4 = sadd.s32 1, %s991_s29  ;;  %s541_s30 = sadd.s32 1, %s995_s30   ;;  %s995_s30 = sphi %s993_s30, %s541_s30   ;;  %s991_s29 = sphi %s989_s29, %s990_s29   ;;  %s987_s28 = sphi %s985_s28, %s554_s28   ;;  %s983_s27 = sphi %s981_s27, %s555_s27  }
 0x1ff   : >> { %548 = vst [vmem:[%s983_s27] sm:$0xff] %v547_v4  ;;  %p550_p0 = scmp.ge.s32.totalorder %s549_s4, %s1201_s23  ;;  %p540_p1 = scmp.ge.s32.totalorder %s541_s30, %s1201_s23 }
 0x201   : >> { %s1235_s4 = smov (%p550_p0, %s549_s4), 0  ;;  %543 = sbr.rel (!%p540_p1) target bundleno = 510 (0x1fe), region = 133 }
 0x202   : >> { %s682_s5 = sshll.u32 %s1235_s4, 3  ;;  %s990_s29 = smov %s1235_s4  }
 0x203   : >> { %s554_s28 = scalar_lea.vmem %s535_s9, %s682_s5 [#allocation2]   ;;  %s555_s27 = scalar_lea.vmem %s537_s26, %s682_s5  }
 0x206 PF: > { %p10_p2 = scmp.ge.s32.totalorder %s1032_s16, 4   ;;  %s1227_s12 = smov %s959_s13 }
 0x207   : > { %s1228_s13 = smov %s1040_s19  ;;  %s1229_s14 = smov %s1032_s16 }
 0x208   :  { %12 = sbr.rel (!%p10_p2) target bundleno = 2 (0x2), region = 144 }

</bundles_post_ra>
